<compile_context>
chip_gen: v5e
topology: v5e:2x2
jax: 0.10.0
libtpu: 0.0.40
codegen_flags: <defaults>
</compile_context>

<pallas_src>
import functools

import jax
import jax.numpy as jnp
from jax.experimental import pallas as pl
from jax.experimental.pallas import tpu as pltpu


def _round_up(v, m):
    return ((v + m - 1) // m) * m


# ------------------------------- Pallas kernel -------------------------------

def _gin_conv_kernel(a_ref, x_ref, w_ref, b_ref, o_ref, acc_ref, *, transform_first):
    """Fused GINConv: out = (A_hat @ x) @ W + b, tiled over (rows, k)."""
    k = pl.program_id(1)

    @pl.when(k == 0)
    def _init():
        acc_ref[...] = jnp.zeros_like(acc_ref)

    if transform_first:
        # xw = x @ W first (smaller Fout), then aggregate: acc += A_hat @ xw
        xw = jnp.dot(x_ref[...], w_ref[...], preferred_element_type=jnp.float32)
        acc_ref[...] += jnp.dot(a_ref[...], xw.astype(a_ref.dtype),
                                preferred_element_type=jnp.float32)
    else:
        # aggregate first: acc += A_hat @ x ; transform in the epilogue
        acc_ref[...] += jnp.dot(a_ref[...], x_ref[...],
                                preferred_element_type=jnp.float32)

    @pl.when(k == pl.num_programs(1) - 1)
    def _finish():
        acc = acc_ref[...]
        if transform_first:
            out = acc + b_ref[...]
        else:
            out = jnp.dot(acc.astype(w_ref.dtype), w_ref[...],
                          preferred_element_type=jnp.float32) + b_ref[...]
        o_ref[...] = out.astype(o_ref.dtype)


def gin_conv(a_hat, x, w_t, b, *, tile=128, out_dtype=jnp.float32):
    """Run the fused GINConv kernel.

    a_hat: [N, N]   dense adjacency with (1+eps)*I already folded in
    x:     [N, Fin] node features
    w_t:   [Fin, Fout] transposed Linear weight
    b:     [Fout]   Linear bias
    """
    n, fin = x.shape
    fout = w_t.shape[1]

    n_pad = _round_up(n, tile)
    fin_pad = _round_up(fin, 128)
    fout_pad = _round_up(fout, 128)

    # zero-padding keeps partial sums exact (padded rows/cols contribute 0)
    a_p = jnp.zeros((n_pad, n_pad), jnp.bfloat16).at[:n, :n].set(
        a_hat.astype(jnp.bfloat16))
    x_p = jnp.zeros((n_pad, fin_pad), jnp.bfloat16).at[:n, :fin].set(
        x.astype(jnp.bfloat16))
    w_p = jnp.zeros((fin_pad, fout_pad), jnp.bfloat16).at[:fin, :fout].set(
        w_t.astype(jnp.bfloat16))
    b_p = jnp.zeros((1, fout_pad), jnp.float32).at[0, :fout].set(
        b.astype(jnp.float32))

    transform_first = fout_pad < fin_pad
    acc_width = fout_pad if transform_first else fin_pad

    grid = (n_pad // tile, n_pad // tile)
    kernel = functools.partial(_gin_conv_kernel, transform_first=transform_first)

    out_p = pl.pallas_call(
        kernel,
        out_shape=jax.ShapeDtypeStruct((n_pad, fout_pad), out_dtype),
        grid_spec=pltpu.PrefetchScalarGridSpec(
            num_scalar_prefetch=0,
            grid=grid,
            in_specs=[
                pl.BlockSpec((tile, tile), lambda i, k: (i, k)),       # A_hat tile
                pl.BlockSpec((tile, fin_pad), lambda i, k: (k, 0)),    # x tile
                pl.BlockSpec((fin_pad, fout_pad), lambda i, k: (0, 0)),  # W resident
                pl.BlockSpec((1, fout_pad), lambda i, k: (0, 0)),      # bias resident
            ],
            out_specs=pl.BlockSpec((tile, fout_pad), lambda i, k: (i, 0)),
            scratch_shapes=[pltpu.VMEM((tile, acc_width), jnp.float32)],
        ),
        compiler_params=pltpu.CompilerParams(
            dimension_semantics=("parallel", "arbitrary"),
            vmem_limit_bytes=32 * 1024 * 1024,
        ),
    )(a_p, x_p, w_p, b_p)

    return out_p[:n, :fout]


# ------------------------------- JAX-side glue --------------------------------

def build_a_hat(edge_index, num_nodes, eps=0.0):
    """Dense A_hat[dst, src] = edge multiplicity, plus (1+eps) on the diagonal."""
    src, dst = edge_index[0], edge_index[1]
    a = jnp.zeros((num_nodes, num_nodes), jnp.float32).at[dst, src].add(1.0)
    return a + (1.0 + eps) * jnp.eye(num_nodes, dtype=jnp.float32)


def init_linear(key, fan_in, fan_out):
    """PyTorch nn.Linear default init (uniform +-1/sqrt(fan_in)); weight [out, in]."""
    kw, kb = jax.random.split(key)
    bound = 1.0 / float(fan_in) ** 0.5
    w = jax.random.uniform(kw, (fan_out, fan_in), jnp.float32, -bound, bound)
    b = jax.random.uniform(kb, (fan_out,), jnp.float32, -bound, bound)
    return w, b


def gin_model_ben1_forward(params, x, edge_index, *, eps=0.0):
    """forward(x, edge_index) = conv1(x, edge_index)   (dropout/nhid/layer unused)."""
    n = x.shape[0]
    a_hat = build_a_hat(edge_index, n, eps)
    w, b = params["line1"]                     # [out_dim, input_dim], [out_dim]
    return gin_conv(a_hat, x, w.T, b)


# ----------------------------------- main --------------------------------------

if __name__ == "__main__":
    # small shapes consistent with the module
    num_nodes = 64
    num_edges = 256
    input_dim, nhid, out_dim, dropout = 16, 32, 8, 0.5   # nhid/dropout unused in fwd

    key = jax.random.PRNGKey(0)
    k_x, k_e, k_p = jax.random.split(key, 3)

    x = jax.random.normal(k_x, (num_nodes, input_dim), jnp.float32)
    edge_index = jax.random.randint(k_e, (2, num_edges), 0, num_nodes, jnp.int32)
    params = {"line1": init_linear(k_p, input_dim, out_dim)}

    out = gin_model_ben1_forward(params, x, edge_index)
    out = jax.block_until_ready(out)
    assert out.shape == (num_nodes, out_dim)

    # plain-JAX reference mirroring the kernel's bf16-in / f32-accumulate path
    a_hat = build_a_hat(edge_index, num_nodes)
    w, b = params["line1"]
    f32 = jnp.float32
    agg = jnp.dot(a_hat.astype(jnp.bfloat16).astype(f32),
                  x.astype(jnp.bfloat16).astype(f32))
    ref = jnp.dot(agg.astype(jnp.bfloat16).astype(f32),
                  w.T.astype(jnp.bfloat16).astype(f32)) + b
    assert jnp.allclose(out, ref, atol=1e-2, rtol=1e-2), \
        float(jnp.max(jnp.abs(out - ref)))

    print("KERNEL_OK")
</pallas_src>

<mosaic_0001>
module attributes {stable_mosaic.version = 11 : i64} {
  func.func @_gin_conv_kernel(%arg0: i32, %arg1: i32, %arg2: memref<128x128xbf16, #tpu.memory_space<vmem>>, %arg3: memref<128x128xbf16, #tpu.memory_space<vmem>>, %arg4: memref<128x128xbf16, #tpu.memory_space<vmem>>, %arg5: memref<1x128xf32, #tpu.memory_space<vmem>>, %arg6: memref<128x128xf32, #tpu.memory_space<vmem>>, %arg7: memref<128x128xf32, #tpu.memory_space<vmem>>) attributes {dimension_semantics = [#tpu.dimension_semantics<parallel>, #tpu.dimension_semantics<arbitrary>], iteration_bounds = array<i64: 1, 1>, scalar_prefetch = 0 : i64, scratch_operands = 1 : i64, tpu.core_type = #tpu.core_type<tc>, window_params = [{transform_indices = @transform_0, window_bounds = array<i64: 128, 128>}, {transform_indices = @transform_1, window_bounds = array<i64: 128, 128>}, {pipeline_mode = #tpu.pipeline_mode<synchronous>, transform_indices = @transform_2, window_bounds = array<i64: 128, 128>}, {pipeline_mode = #tpu.pipeline_mode<synchronous>, transform_indices = @transform_3, window_bounds = array<i64: 1, 128>}, {transform_indices = @transform_4, window_bounds = array<i64: 128, 128>}]} {
    %c0_i32 = arith.constant 0 : i32
    %0 = arith.cmpi eq, %arg1, %c0_i32 : i32
    %1 = arith.extui %0 : i1 to i32
    %c0_i32_0 = arith.constant 0 : i32
    %2 = arith.cmpi ne, %1, %c0_i32_0 : i32
    scf.if %2 {
      %cst_10 = arith.constant 0.000000e+00 : f32
      %12 = vector.broadcast %cst_10 : f32 to vector<128x128xf32>
      %c0_11 = arith.constant 0 : index
      %c0_12 = arith.constant 0 : index
      %13 = vector.load %arg7[%c0_11, %c0_12] : memref<128x128xf32, #tpu.memory_space<vmem>>, vector<128x128xf32>
      tpu.vector_store %arg7[%c0_11, %c0_12], %12 {strides = array<i32>} : memref<128x128xf32, #tpu.memory_space<vmem>>, vector<128x128xf32>,
    } else {
    }
    %c0 = arith.constant 0 : index
    %c0_1 = arith.constant 0 : index
    %3 = vector.load %arg7[%c0, %c0_1] : memref<128x128xf32, #tpu.memory_space<vmem>>, vector<128x128xf32>
    %c0_2 = arith.constant 0 : index
    %c0_3 = arith.constant 0 : index
    %4 = vector.load %arg2[%c0_2, %c0_3] : memref<128x128xbf16, #tpu.memory_space<vmem>>, vector<128x128xbf16>
    %c0_4 = arith.constant 0 : index
    %c0_5 = arith.constant 0 : index
    %5 = vector.load %arg3[%c0_4, %c0_5] : memref<128x128xbf16, #tpu.memory_space<vmem>>, vector<128x128xbf16>
    %cst = arith.constant dense<0.000000e+00> : vector<128x128xf32>
    %6 = tpu.matmul %4, %5, %cst {dimension_numbers = #tpu.dot_dimension_numbers<[1], [0], [0], [1], [0, 0, 1, 1], [], []>} : vector<128x128xbf16>, vector<128x128xbf16>, vector<128x128xf32> -> vector<128x128xf32>
    %7 = arith.addf %3, %6 : vector<128x128xf32>
    %c0_6 = arith.constant 0 : index
    %c0_7 = arith.constant 0 : index
    %8 = vector.load %arg7[%c0_6, %c0_7] : memref<128x128xf32, #tpu.memory_space<vmem>>, vector<128x128xf32>
    tpu.vector_store %arg7[%c0_6, %c0_7], %7 {strides = array<i32>} : memref<128x128xf32, #tpu.memory_space<vmem>>, vector<128x128xf32>,
    %c0_i32_8 = arith.constant 0 : i32
    %9 = arith.cmpi eq, %arg1, %c0_i32_8 : i32
    %10 = arith.extui %9 : i1 to i32
    %c0_i32_9 = arith.constant 0 : i32
    %11 = arith.cmpi ne, %10, %c0_i32_9 : i32
    scf.if %11 {
      %c0_10 = arith.constant 0 : index
      %c0_11 = arith.constant 0 : index
      %12 = vector.load %arg7[%c0_10, %c0_11] : memref<128x128xf32, #tpu.memory_space<vmem>>, vector<128x128xf32>
      %13 = arith.truncf %12 : vector<128x128xf32> to vector<128x128xbf16>
      %c0_12 = arith.constant 0 : index
      %c0_13 = arith.constant 0 : index
      %14 = vector.load %arg4[%c0_12, %c0_13] : memref<128x128xbf16, #tpu.memory_space<vmem>>, vector<128x128xbf16>
      %cst_14 = arith.constant dense<0.000000e+00> : vector<128x128xf32>
      %15 = tpu.matmul %13, %14, %cst_14 {dimension_numbers = #tpu.dot_dimension_numbers<[1], [0], [0], [1], [0, 0, 1, 1], [], []>} : vector<128x128xbf16>, vector<128x128xbf16>, vector<128x128xf32> -> vector<128x128xf32>
      %c0_15 = arith.constant 0 : index
      %c0_16 = arith.constant 0 : index
      %16 = vector.load %arg5[%c0_15, %c0_16] : memref<1x128xf32, #tpu.memory_space<vmem>>, vector<1x128xf32>
      %17 = vector.broadcast %16 : vector<1x128xf32> to vector<128x128xf32>
      %18 = arith.addf %15, %17 : vector<128x128xf32>
      %c0_17 = arith.constant 0 : index
      %c0_18 = arith.constant 0 : index
      %19 = vector.load %arg6[%c0_17, %c0_18] : memref<128x128xf32, #tpu.memory_space<vmem>>, vector<128x128xf32>
      tpu.vector_store %arg6[%c0_17, %c0_18], %18 {strides = array<i32>} : memref<128x128xf32, #tpu.memory_space<vmem>>, vector<128x128xf32>,
    } else {
    }
    return
  }
  func.func @transform_0(%arg0: i32, %arg1: i32) -> (i32, i32) {
    %c0_i32 = arith.constant 0 : i32
    return %arg0, %arg1 : i32, i32
  }
  func.func @transform_1(%arg0: i32, %arg1: i32) -> (i32, i32) {
    %c0_i32 = arith.constant 0 : i32
    %c0_i32_0 = arith.constant 0 : i32
    return %arg1, %c0_i32 : i32, i32
  }
  func.func @transform_2(%arg0: i32, %arg1: i32) -> (i32, i32) {
    %c0_i32 = arith.constant 0 : i32
    %c0_i32_0 = arith.constant 0 : i32
    %c0_i32_1 = arith.constant 0 : i32
    return %c0_i32, %c0_i32_0 : i32, i32
  }
  func.func @transform_3(%arg0: i32, %arg1: i32) -> (i32, i32) {
    %c0_i32 = arith.constant 0 : i32
    %c0_i32_0 = arith.constant 0 : i32
    %c0_i32_1 = arith.constant 0 : i32
    return %c0_i32, %c0_i32_0 : i32, i32
  }
  func.func @transform_4(%arg0: i32, %arg1: i32) -> (i32, i32) {
    %c0_i32 = arith.constant 0 : i32
    %c0_i32_0 = arith.constant 0 : i32
    return %arg0, %c0_i32 : i32, i32
  }
}

</mosaic_0001>

<bundles_post_ra>
// kernel: tpu_custom_call.1
= control target key start
LH: loop header
LB: loop body
LE: loop exit
PB: predicated region body
PF: predicated region fallthrough
CT: control target
= control target key end

     0   :  { %9 = vsyncpa [#allocation4], 0  ;;  %s785_s0 = inlined_call_operand.hbm [shape: bf16[128,128], index: 0, kind: input, shape index: {}]   ;;  %s786_s1 = inlined_call_operand.hbm [shape: bf16[128,128], index: 1, kind: input, shape index: {}]   ;;  %s787_s2 = inlined_call_operand.hbm [shape: bf16[128,128], index: 2, kind: input, shape index: {}]   ;;  %s788_s3 = inlined_call_operand.vmem [shape: f32[1,128], index: 3, kind: input, shape index: {}]   ;;  %s789_s4 = inlined_call_operand.hbm [shape: f32[128,128], index: 4, kind: output, shape index: {}]  }
   0x1   :  { %10 = vsyncpa [#allocation7], 0 }
   0x2   :  { %11 = vsyncpa [#allocation5], 0  ;;  %s29_s17 = sshll.u32 %s786_s1, 4  ;;  %s737_s18 = smov [#allocation6]   ;;  %s30_s17 = int_to_ptr.hbm [resolvable:$true] %s29_s17 }
   0x3   :  { %s31_s19 = sshll.u32 %s737_s18, 4  ;;  %s16_s22 = sshll.u32 %s785_s0, 4  ;;  %s32_s19 = int_to_ptr.vmem [resolvable:$true] %s31_s19  ;;  %s17_s22 = int_to_ptr.hbm [resolvable:$true] %s16_s22 }
   0x4   :  { %s738_s23 = smov 64   ;;  %s739_s24 = smov 4  }
   0x5   :  { %37 = dma.hbm_to_vmem [thread:$0]  %s30_s17, 1024, %s32_s19, [#allocation7], %s738_s23, %s738_s23, %s739_s24  }
   0x6   :  { %s740_s25 = smov [#allocation3]   ;;  %s42_s29 = sshll.u32 %s787_s2, 4  ;;  %s43_s29 = int_to_ptr.hbm [resolvable:$true] %s42_s29 }
   0x7   :  { %s18_s26 = sshll.u32 %s740_s25, 4  ;;  %s741_s1 = smov [#allocation8]   ;;  %s19_s26 = int_to_ptr.vmem [resolvable:$true] %s18_s26 }
   0x8   :  { %24 = dma.hbm_to_vmem [thread:$0]  %s17_s22, 1024, %s19_s26, [#allocation4], %s738_s23, %s738_s23, %s739_s24  }
   0x9   :  { %s44_s30 = sshll.u32 %s741_s1, 4  ;;  %s45_s30 = int_to_ptr.vmem [resolvable:$true] %s44_s30 }
   0xa   :  { %50 = dma.hbm_to_vmem [thread:$0]  %s43_s29, 1024, %s45_s30, [#allocation7], %s738_s23, %s738_s23, %s739_s24  }
   0xb   :  { %731 = dma.done.wait [#allocation4], 1024  }
   0xc   :  { %732 = vsyncadd [#allocation4], 4294966272 }
   0xd   :  { %733 = dma.done.wait [#allocation7], 2048  }
   0xe   :  { %734 = vsyncadd [#allocation7], 4294965248  ;;  %v601_v0 = vld [vmem:[#allocation6 + $0x38] sm:$0xff]  ;;  %v600_v1 = vld [vmem:[#allocation6 + $0x30] sm:$0xff]  ;;  %s476_s8 = sshll.u32 %s789_s4, 4  ;;  %s743_s9 = smov 128   ;;  %s477_s8 = int_to_ptr.hbm [resolvable:$true] %s476_s8 }
   0xf   :  { %229 = vmatpush.bf16.msra.mxu0 %v601_v0  ;;  %610 = vmatpush.bf16.msra.mxu2 %v601_v0  ;;  %v599_v2 = vld [vmem:[#allocation6 + $0x28] sm:$0xff]  ;;  %v598_v3 = vld [vmem:[#allocation6 + $0x20] sm:$0xff]  ;;  %v597_v4 = vld [vmem:[#allocation6 + $0x18] sm:$0xff]  ;;  %s744_s10 = smov 8  }
  0x10   :  { %v596_v5 = vld [vmem:[#allocation6 + $0x10] sm:$0xff]  ;;  %v595_v6 = vld [vmem:[#allocation6 + $0x8] sm:$0xff]  ;;  %v594_v7 = vld [vmem:[#allocation6] sm:$0xff] }
  0x11   :  { %v586_v8 = vld [vmem:[#allocation3] sm:$0xff]  ;;  %v587_v10 = vld [vmem:[#allocation3 + $0x8] sm:$0xff]  ;;  %v609_v12 = vld [vmem:[#allocation8 + $0x38] sm:$0xff] }
  0x12   :  { %v590_v9 = vld [vmem:[#allocation3 + $0x20] sm:$0xff]  ;;  %v591_v11 = vld [vmem:[#allocation3 + $0x28] sm:$0xff]  ;;  %405 = vmatpush.bf16.msra.mxu1 %v609_v12  ;;  %v608_v13 = vld [vmem:[#allocation8 + $0x30] sm:$0xff]  ;;  %618 = vmatpush.bf16.msra.mxu3 %v609_v12 }
  0x13   :  { %230 = vmatpush.bf16.msra.mxu0 %v600_v1  ;;  %611 = vmatpush.bf16.msra.mxu2 %v600_v1  ;;  %v607_v14 = vld [vmem:[#allocation8 + $0x28] sm:$0xff]  ;;  %v606_v15 = vld [vmem:[#allocation8 + $0x20] sm:$0xff]  ;;  %v588_v16 = vld [vmem:[#allocation3 + $0x10] sm:$0xff] }
  0x14   :  { %v592_v17 = vld [vmem:[#allocation3 + $0x30] sm:$0xff]  ;;  %v605_v18 = vld [vmem:[#allocation8 + $0x18] sm:$0xff]  ;;  %v603_v22 = vld [vmem:[#allocation8 + $0x8] sm:$0xff] }
  0x15   :  { %v589_v19 = vld [vmem:[#allocation3 + $0x18] sm:$0xff]  ;;  %v604_v21 = vld [vmem:[#allocation8 + $0x10] sm:$0xff]  ;;  %v602_v23 = vld [vmem:[#allocation8] sm:$0xff] }
  0x16   :  { %406 = vmatpush.bf16.msra.mxu1 %v608_v13  ;;  %619 = vmatpush.bf16.msra.mxu3 %v608_v13  ;;  %v593_v20 = vld [vmem:[#allocation3 + $0x38] sm:$0xff]  ;;  %v634_v48 = vld [vmem:[%s788_s3] ss:$0 sm:$0xff]  ;;  %s742_s3 = smov [#allocation9]  }
  0x17   :  { %231 = vmatpush.bf16.msra.mxu0 %v599_v2  ;;  %612 = vmatpush.bf16.msra.mxu2 %v599_v2  ;;  %s474_s5 = sshll.u32 %s742_s3, 4  ;;  %s475_s5 = int_to_ptr.vmem [resolvable:$true] %s474_s5 }
  0x1a   :  { %407 = vmatpush.bf16.msra.mxu1 %v607_v14  ;;  %620 = vmatpush.bf16.msra.mxu3 %v607_v14 }
  0x1b   :  { %232 = vmatpush.bf16.msra.mxu0 %v598_v3  ;;  %613 = vmatpush.bf16.msra.mxu2 %v598_v3 }
  0x1e   :  { %408 = vmatpush.bf16.msra.mxu1 %v606_v15  ;;  %621 = vmatpush.bf16.msra.mxu3 %v606_v15 }
  0x1f   :  { %233 = vmatpush.bf16.msra.mxu0 %v597_v4  ;;  %614 = vmatpush.bf16.msra.mxu2 %v597_v4 }
  0x22   :  { %409 = vmatpush.bf16.msra.mxu1 %v605_v18  ;;  %622 = vmatpush.bf16.msra.mxu3 %v605_v18 }
  0x23   :  { %234 = vmatpush.bf16.msra.mxu0 %v596_v5  ;;  %615 = vmatpush.bf16.msra.mxu2 %v596_v5 }
  0x26   :  { %410 = vmatpush.bf16.msra.mxu1 %v604_v21  ;;  %623 = vmatpush.bf16.msra.mxu3 %v604_v21 }
  0x27   :  { %235 = vmatpush.bf16.msra.mxu0 %v595_v6  ;;  %616 = vmatpush.bf16.msra.mxu2 %v595_v6 }
  0x2a   :  { %411 = vmatpush.bf16.msra.mxu1 %v603_v22  ;;  %624 = vmatpush.bf16.msra.mxu3 %v603_v22 }
  0x2b   :  { %236 = vmatpush.bf16.msra.mxu0 %v594_v7  ;;  %617 = vmatpush.bf16.msra.mxu2 %v594_v7 }
  0x2e   :  { %237 = vmatmul.bf16.vlgmr.msra.gmra.mxu0 %v586_v8  ;;  %257 = vmatmul.bf16.vlgmr.msra.gmra.mxu2 %v590_v9 }
  0x2f   :  { %412 = vmatpush.bf16.msra.mxu1 %v602_v23  ;;  %625 = vmatpush.bf16.msra.mxu3 %v602_v23 }
  0x3e   :  { %242 = vmatmul.bf16.gmra.mxu0 %v587_v10  ;;  %262 = vmatmul.bf16.gmra.mxu2 %v591_v11 }
  0x4e   :  { %247 = vmatmul.bf16.gmra.mxu0 %v588_v16  ;;  %267 = vmatmul.bf16.gmra.mxu2 %v592_v17 }
  0x5e   :  { %252 = vmatmul.bf16.gmra.mxu0 %v589_v19  ;;  %272 = vmatmul.bf16.gmra.mxu2 %v593_v20 }
  0xab   :  { %v238_v24 = vpop.f32.mrf.mxu0 }
  0xb1   :  { %v258_v25 = vpop.f32.mrf.mxu2 }
  0xb3   :  { %v240_v26 = vpop.f32.mrf.mxu0 }
  0xb4   :  { %v329_v27 = vpack.c.bf16 %v240_v26, %v238_v24 }
  0xb6   :  { %413 = vmatmul.bf16.vlgmr.msra.gmra.mxu1 %v329_v27 }
  0xb9   :  { %v260_v28 = vpop.f32.mrf.mxu2 }
  0xba   :  { %v333_v29 = vpack.c.bf16 %v260_v28, %v258_v25 }
  0xbb   :  { %v243_v30 = vpop.f32.mrf.mxu0 }
  0xbc   :  { %433 = vmatmul.bf16.vlgmr.msra.gmra.mxu3 %v333_v29 }
  0xc1   :  { %v263_v31 = vpop.f32.mrf.mxu2 }
  0xc3   :  { %v245_v32 = vpop.f32.mrf.mxu0 }
  0xc4   :  { %v330_v33 = vpack.c.bf16 %v245_v32, %v243_v30 }
  0xc6   :  { %418 = vmatmul.bf16.gmra.mxu1 %v330_v33 }
  0xc9   :  { %v265_v34 = vpop.f32.mrf.mxu2 }
  0xca   :  { %v334_v35 = vpack.c.bf16 %v265_v34, %v263_v31 }
  0xcb   :  { %v248_v36 = vpop.f32.mrf.mxu0 }
  0xcc   :  { %438 = vmatmul.bf16.gmra.mxu3 %v334_v35 }
  0xd1   :  { %v268_v37 = vpop.f32.mrf.mxu2 }
  0xd3   :  { %v250_v38 = vpop.f32.mrf.mxu0 }
  0xd4   :  { %v331_v39 = vpack.c.bf16 %v250_v38, %v248_v36 }
  0xd6   :  { %423 = vmatmul.bf16.gmra.mxu1 %v331_v39 }
  0xd9   :  { %v270_v40 = vpop.f32.mrf.mxu2 }
  0xda   :  { %v335_v41 = vpack.c.bf16 %v270_v40, %v268_v37 }
  0xdb   :  { %v253_v42 = vpop.f32.mrf.mxu0 }
  0xdc   :  { %443 = vmatmul.bf16.gmra.mxu3 %v335_v41 }
  0xe1   :  { %v273_v43 = vpop.f32.mrf.mxu2 }
  0xe3   :  { %v255_v44 = vpop.f32.mrf.mxu0 }
  0xe4   :  { %v332_v45 = vpack.c.bf16 %v255_v44, %v253_v42 }
  0xe6   :  { %428 = vmatmul.bf16.gmra.mxu1 %v332_v45 }
  0xe9   :  { %v275_v46 = vpop.f32.mrf.mxu2 }
  0xea   :  { %v336_v47 = vpack.c.bf16 %v275_v46, %v273_v43 }
  0xec   :  { %448 = vmatmul.bf16.gmra.mxu3 %v336_v47 }
 0x133   :  { %v414_v49 = vpop.f32.mrf.mxu1 }
 0x134   :  { %v415_v50 = vadd.f32 %v634_v48, %v414_v49 }
 0x136   :  { %454 = vst [vmem:[#allocation9] sm:$0xff] %v415_v50 }
 0x13b   :  { %v416_v51 = vpop.f32.mrf.mxu1 }
 0x13c   :  { %v417_v52 = vadd.f32 %v634_v48, %v416_v51 }
 0x13e   :  { %455 = vst [vmem:[#allocation9 + $0x8] sm:$0xff] %v417_v52 }
 0x13f   :  { %v434_v53 = vpop.f32.mrf.mxu3 }
 0x140   :  { %v435_v54 = vadd.f32 %v634_v48, %v434_v53 }
 0x142   :  { %462 = vst [vmem:[#allocation9 + $0x40] sm:$0xff] %v435_v54 }
 0x143   :  { %v419_v55 = vpop.f32.mrf.mxu1 }
 0x144   :  { %v420_v56 = vadd.f32 %v634_v48, %v419_v55 }
 0x146   :  { %456 = vst [vmem:[#allocation9 + $0x10] sm:$0xff] %v420_v56 }
 0x147   :  { %v436_v57 = vpop.f32.mrf.mxu3 }
 0x148   :  { %v437_v58 = vadd.f32 %v634_v48, %v436_v57 }
 0x14a   :  { %463 = vst [vmem:[#allocation9 + $0x48] sm:$0xff] %v437_v58 }
 0x14b   :  { %v421_v59 = vpop.f32.mrf.mxu1 }
 0x14c   :  { %v422_v60 = vadd.f32 %v634_v48, %v421_v59 }
 0x14e   :  { %457 = vst [vmem:[#allocation9 + $0x18] sm:$0xff] %v422_v60 }
 0x14f   :  { %v439_v61 = vpop.f32.mrf.mxu3 }
 0x150   :  { %v440_v62 = vadd.f32 %v634_v48, %v439_v61 }
 0x152   :  { %464 = vst [vmem:[#allocation9 + $0x50] sm:$0xff] %v440_v62 }
 0x153   :  { %v424_v63 = vpop.f32.mrf.mxu1 }
 0x154   :  { %v425_v0 = vadd.f32 %v634_v48, %v424_v63 }
 0x156   :  { %458 = vst [vmem:[#allocation9 + $0x20] sm:$0xff] %v425_v0 }
 0x157   :  { %v441_v1 = vpop.f32.mrf.mxu3 }
 0x158   :  { %v442_v2 = vadd.f32 %v634_v48, %v441_v1 }
 0x15a   :  { %465 = vst [vmem:[#allocation9 + $0x58] sm:$0xff] %v442_v2 }
 0x15b   :  { %v426_v3 = vpop.f32.mrf.mxu1 }
 0x15c   :  { %v427_v4 = vadd.f32 %v634_v48, %v426_v3 }
 0x15e   :  { %459 = vst [vmem:[#allocation9 + $0x28] sm:$0xff] %v427_v4 }
 0x15f   :  { %v444_v5 = vpop.f32.mrf.mxu3 }
 0x160   :  { %v445_v6 = vadd.f32 %v634_v48, %v444_v5 }
 0x162   :  { %466 = vst [vmem:[#allocation9 + $0x60] sm:$0xff] %v445_v6 }
 0x163   :  { %v429_v7 = vpop.f32.mrf.mxu1 }
 0x164   :  { %v430_v8 = vadd.f32 %v634_v48, %v429_v7 }
 0x166   :  { %460 = vst [vmem:[#allocation9 + $0x30] sm:$0xff] %v430_v8 }
 0x167   :  { %v446_v9 = vpop.f32.mrf.mxu3 }
 0x168   :  { %v447_v10 = vadd.f32 %v634_v48, %v446_v9 }
 0x16a   :  { %467 = vst [vmem:[#allocation9 + $0x68] sm:$0xff] %v447_v10 }
 0x16b   :  { %v431_v11 = vpop.f32.mrf.mxu1 }
 0x16c   :  { %v432_v12 = vadd.f32 %v634_v48, %v431_v11 }
 0x16e   :  { %461 = vst [vmem:[#allocation9 + $0x38] sm:$0xff] %v432_v12 }
 0x16f   :  { %v449_v13 = vpop.f32.mrf.mxu3 }
 0x170   :  { %v450_v14 = vadd.f32 %v634_v48, %v449_v13 }
 0x172   :  { %468 = vst [vmem:[#allocation9 + $0x70] sm:$0xff] %v450_v14 }
 0x177   :  { %v451_v15 = vpop.f32.mrf.mxu3 }
 0x178   :  { %v452_v16 = vadd.f32 %v634_v48, %v451_v15 }
 0x17a   :  { %469 = vst [vmem:[#allocation9 + $0x78] sm:$0xff] %v452_v16 }
 0x17b   :  { %482 = dma.vmem_to_hbm [thread:$0]  %s475_s5, 2048, %s477_s8, [#allocation5], %s743_s9, %s743_s9, %s744_s10  }
 0x17c   :  { %735 = dma.done.wait [#allocation5], 2048  }
 0x17d   :  { %736 = vsyncadd [#allocation5], 4294965248 }
 0x17e   :  { %487 = vsyncpa [#allocation4], 1 }
 0x17f   :  { %488 = vsyncpa [#allocation7], 1 }
 0x180   :  { %489 = vsyncpa [#allocation5], 1 }

</bundles_post_ra>
